<compile_context>
chip_gen: v5e
topology: v5e:2x2
jax: 0.10.0
libtpu: 0.0.40
codegen_flags: <defaults>
</compile_context>

<pallas_src>
from functools import partial

import numpy as np
import jax
import jax.numpy as jnp
from jax.experimental import pallas as pl
from jax.experimental.pallas import tpu as pltpu


COMPUTE_DTYPE = jnp.bfloat16   # MXU-native operand dtype; accumulation is f32.


def _round_up(x, m):
    return (x + m - 1) // m * m


# ----------------------------------------------------------------------------
# Pallas kernel: fused   out_T = relu?( (W_T @ A_T) * scale + shift )
#   w_ref : (N, K)        conv weight, PyTorch (Cout, Cin*kD*kH*kW) flattening
#   a_ref : (K, TILE_M)   im2col patches (transposed: big M axis on lanes)
#   s_ref/t_ref : (N, 1)  BatchNorm affine with conv bias folded in
# ----------------------------------------------------------------------------
def _gemm_t_fused_kernel(w_ref, a_ref, s_ref, t_ref, o_ref, *, apply_relu):
    acc = jnp.dot(w_ref[...], a_ref[...], preferred_element_type=jnp.float32)
    y = acc * s_ref[...] + t_ref[...]
    if apply_relu:
        y = jnp.maximum(y, 0.0)
    o_ref[...] = y.astype(o_ref.dtype)


def gemm_t_fused(w_t, a_t, scale, shift, apply_relu, *,
                 compute_dtype=COMPUTE_DTYPE, tile_m_cap=1024):
    """out_T (N, M) = relu?((w_t @ a_t) * scale + shift), M tiled on a 1-D grid."""
    N, K = w_t.shape
    K2, M = a_t.shape
    assert K == K2

    # Lane-dense tiling of the large M axis (multiple of 128).
    tile_m = tile_m_cap if M >= tile_m_cap else _round_up(max(M, 1), 128)
    m_pad = _round_up(M, tile_m)

    a_t = a_t.astype(compute_dtype)
    if m_pad != M:
        a_t = jnp.pad(a_t, ((0, 0), (0, m_pad - M)))
    grid_m = m_pad // tile_m

    s2 = scale.reshape(N, 1).astype(jnp.float32)
    t2 = shift.reshape(N, 1).astype(jnp.float32)

    out = pl.pallas_call(
        partial(_gemm_t_fused_kernel, apply_relu=apply_relu),
        out_shape=jax.ShapeDtypeStruct((N, m_pad), jnp.float32),
        grid=(grid_m,),
        in_specs=[
            pl.BlockSpec((N, K), lambda i: (0, 0)),        # weights: resident
            pl.BlockSpec((K, tile_m), lambda i: (0, i)),   # patches: streamed
            pl.BlockSpec((N, 1), lambda i: (0, 0)),
            pl.BlockSpec((N, 1), lambda i: (0, 0)),
        ],
        out_specs=pl.BlockSpec((N, tile_m), lambda i: (0, i)),
        compiler_params=pltpu.CompilerParams(
            dimension_semantics=("parallel",),             # shard M over TCs (v7x)
            vmem_limit_bytes=32 * 1024 * 1024),
    )(w_t.astype(compute_dtype), a_t, s2, t2)
    return out[:, :M]                                       # (N, M)


# ----------------------------------------------------------------------------
# Transposed im2col for 3D convolution (NCDHW)
#   Returns A_T of shape (Cin*kd*kh*kw, B*Do*Ho*Wo); row order (Cin, kd, kh, kw)
#   matches PyTorch weight.reshape(Cout, -1); column order is (B, Do, Ho, Wo).
# ----------------------------------------------------------------------------
def im2col_3d_t(x, ksize, stride, padding):
    B, C, D, H, W = x.shape
    kd, kh, kw = ksize
    sd, sh, sw = stride
    pd, ph, pw = padding
    xp = jnp.pad(x, ((0, 0), (0, 0), (pd, pd), (ph, ph), (pw, pw)))
    Do = (D + 2 * pd - kd) // sd + 1
    Ho = (H + 2 * ph - kh) // sh + 1
    Wo = (W + 2 * pw - kw) // sw + 1
    taps = []
    for dz in range(kd):
        for dy in range(kh):
            for dx in range(kw):
                sl = xp[:, :,
                        dz:dz + Do * sd:sd,
                        dy:dy + Ho * sh:sh,
                        dx:dx + Wo * sw:sw]            # (B, C, Do, Ho, Wo)
                taps.append(sl)
    patches = jnp.stack(taps, axis=2)                   # (B, C, T, Do, Ho, Wo)
    a_t = patches.transpose(1, 2, 0, 3, 4, 5).reshape(
        C * kd * kh * kw, B * Do * Ho * Wo)
    return a_t, (Do, Ho, Wo)


def colsT_to_ncdhw(y_t, B, dims, cout):
    Do, Ho, Wo = dims
    return y_t.reshape(cout, B, Do, Ho, Wo).transpose(1, 0, 2, 3, 4)


# ----------------------------------------------------------------------------
# Parameter init (deterministic, kaiming-uniform-like, zero biases)
# ----------------------------------------------------------------------------
def conv3d_params(key, cin, cout, ksize):
    fan_in = cin * ksize[0] * ksize[1] * ksize[2]
    bound = float(np.sqrt(6.0 / fan_in))
    w = jax.random.uniform(key, (cout, cin) + ksize, jnp.float32, -bound, bound)
    b = jnp.zeros((cout,), jnp.float32)
    return w, b


def bn_params(key, c):
    k1, k2 = jax.random.split(key)
    return {
        "gamma": 1.0 + 0.1 * jax.random.uniform(k1, (c,), jnp.float32, -1.0, 1.0),
        "beta": 0.1 * jax.random.uniform(k2, (c,), jnp.float32, -1.0, 1.0),
        "mean": jnp.zeros((c,), jnp.float32),
        "var": jnp.ones((c,), jnp.float32),
    }


def bn_affine(bn, eps=1e-5):
    s = bn["gamma"] / jnp.sqrt(bn["var"] + eps)
    t = bn["beta"] - bn["mean"] * s
    return s, t


def linear_params(key, fin, fout):
    bound = float(np.sqrt(6.0 / fin))
    w = jax.random.uniform(key, (fout, fin), jnp.float32, -bound, bound)
    b = jnp.zeros((fout,), jnp.float32)
    return w, b


# ParallelConvBlock specs: (kernel, padding) — all depth-only, output-shape-preserving.
PCB_SPECS = [((1, 1, 1), (0, 0, 0)),
             ((3, 1, 1), (1, 0, 0)),
             ((5, 1, 1), (2, 0, 0)),
             ((11, 1, 1), (5, 0, 0))]


def init_params(key, input_channels, n_classes, patch_size):
    keys = jax.random.split(key, 16)
    params = {}
    params["conv1_w"], params["conv1_b"] = conv3d_params(keys[0], 1, 16, (11, 3, 3))
    params["bn1"] = bn_params(keys[1], 16)
    for blk, base in (("pcb1", 2), ("pcb2", 6)):
        p = {}
        for j, (ks, _) in enumerate(PCB_SPECS):
            w, b = conv3d_params(keys[base + j], 16, 16, ks)
            p[f"w{j}"], p[f"b{j}"] = w, b
        params[blk] = p
    params["conv4_w"], params["conv4_b"] = conv3d_params(keys[10], 16, 16, (3, 2, 2))
    params["bn4"] = bn_params(keys[11], 16)

    # final flattened size (mirrors _get_final_flattened_size)
    D1 = (input_channels - 11) // 3 + 1
    H1 = patch_size - 2
    D2, H2 = D1 - 2, H1 - 1
    features = 16 * D2 * H2 * H2
    params["fc_w"], params["fc_b"] = linear_params(keys[12], features, n_classes)
    return params, features


def fuse_pcb_weights(p):
    """Sum of four depth-only convs (1/3/5/11-tap, shape-preserving padding)
    == one 11-tap conv with the smaller kernels zero-padded to the center."""
    w = jnp.zeros((16, 16, 11, 1, 1), jnp.float32)
    w = w.at[:, :, 5:6].add(p["w0"])     # 1-tap at depth offset 0
    w = w.at[:, :, 4:7].add(p["w1"])     # 3-tap at offsets -1..+1
    w = w.at[:, :, 3:8].add(p["w2"])     # 5-tap at offsets -2..+2
    w = w + p["w3"]                      # 11-tap
    b = p["b0"] + p["b1"] + p["b2"] + p["b3"]
    return w, b


# ----------------------------------------------------------------------------
# Forward pass (Pallas)
# ----------------------------------------------------------------------------
def nm3dcnn_forward(x, params, features_size, compute_dtype=COMPUTE_DTYPE):
    B = x.shape[0]
    ones16 = jnp.ones((16,), jnp.float32)

    # conv1 + bn1 + relu   (bias folded into the BN shift)
    a_t, dims = im2col_3d_t(x, (11, 3, 3), (3, 1, 1), (0, 0, 0))
    s, t = bn_affine(params["bn1"])
    y_t = gemm_t_fused(params["conv1_w"].reshape(16, -1), a_t,
                       s, params["conv1_b"] * s + t, True,
                       compute_dtype=compute_dtype)
    h = colsT_to_ncdhw(y_t, B, dims, 16)

    # pcb_1 + relu, pcb_2 + relu (fused single 11-tap depth conv each)
    for blk in ("pcb1", "pcb2"):
        wf, bf = fuse_pcb_weights(params[blk])
        a_t, dims = im2col_3d_t(h, (11, 1, 1), (1, 1, 1), (5, 0, 0))
        y_t = gemm_t_fused(wf.reshape(16, -1), a_t, ones16, bf, True,
                           compute_dtype=compute_dtype)
        h = colsT_to_ncdhw(y_t, B, dims, 16)

    # conv4 + bn4 + relu
    a_t, dims = im2col_3d_t(h, (3, 2, 2), (1, 1, 1), (0, 0, 0))
    s, t = bn_affine(params["bn4"])
    y_t = gemm_t_fused(params["conv4_w"].reshape(16, -1), a_t,
                       s, params["conv4_b"] * s + t, True,
                       compute_dtype=compute_dtype)
    h = colsT_to_ncdhw(y_t, B, dims, 16)

    # flatten (C, D, H, W order, matching x.view(-1, features_size)) + fc
    feat = h.reshape(B, features_size)
    n_classes = params["fc_w"].shape[0]
    y_t = gemm_t_fused(params["fc_w"], feat.T,
                       jnp.ones((n_classes,), jnp.float32), params["fc_b"],
                       False, compute_dtype=compute_dtype)
    return y_t.T                                          # (B, n_classes)


# ----------------------------------------------------------------------------
# Pure-JAX f32 reference (lax.conv_general_dilated) for correctness check
# ----------------------------------------------------------------------------
def conv3d_ref(x, w, b, stride, padding):
    out = jax.lax.conv_general_dilated(
        x, w, window_strides=stride,
        padding=[(p, p) for p in padding],
        dimension_numbers=("NCDHW", "OIDHW", "NCDHW"))
    return out + b.reshape(1, -1, 1, 1, 1)


def nm3dcnn_ref(x, params, features_size):
    def bn(h, bnp):
        s, t = bn_affine(bnp)
        return h * s.reshape(1, -1, 1, 1, 1) + t.reshape(1, -1, 1, 1, 1)

    h = conv3d_ref(x, params["conv1_w"], params["conv1_b"], (3, 1, 1), (0, 0, 0))
    h = jax.nn.relu(bn(h, params["bn1"]))
    for blk in ("pcb1", "pcb2"):
        p = params[blk]
        acc = 0.0
        for j, (ks, pad) in enumerate(PCB_SPECS):
            acc = acc + conv3d_ref(h, p[f"w{j}"], p[f"b{j}"], (1, 1, 1), pad)
        h = jax.nn.relu(acc)
    h = conv3d_ref(h, params["conv4_w"], params["conv4_b"], (1, 1, 1), (0, 0, 0))
    h = jax.nn.relu(bn(h, params["bn4"]))
    feat = h.reshape(h.shape[0], features_size)
    return feat @ params["fc_w"].T + params["fc_b"]


# ----------------------------------------------------------------------------
if __name__ == "__main__":
    input_channels = 20   # spectral bands
    patch_size = 7
    n_classes = 10
    batch = 2

    key = jax.random.PRNGKey(0)
    kx, kp = jax.random.split(key)
    x = jax.random.normal(kx, (batch, 1, input_channels, patch_size, patch_size),
                          jnp.float32)
    params, features_size = init_params(kp, input_channels, n_classes, patch_size)

    ref = jax.block_until_ready(nm3dcnn_ref(x, params, features_size))

    # 1) exact-path check (f32 GEMM operands): validates indexing / PCB fusion tightly
    fwd_f32 = jax.jit(partial(nm3dcnn_forward, features_size=features_size,
                              compute_dtype=jnp.float32))
    out_f32 = jax.block_until_ready(fwd_f32(x, params))
    assert out_f32.shape == (batch, n_classes), out_f32.shape
    np.testing.assert_allclose(np.asarray(out_f32), np.asarray(ref),
                               rtol=2e-3, atol=2e-3)

    # 2) fast path (bf16 operands, f32 accumulation): looser tolerance for bf16 rounding
    fwd_bf16 = jax.jit(partial(nm3dcnn_forward, features_size=features_size,
                               compute_dtype=jnp.bfloat16))
    out = jax.block_until_ready(fwd_bf16(x, params))
    assert out.shape == (batch, n_classes), out.shape
    np.testing.assert_allclose(np.asarray(out), np.asarray(ref),
                               rtol=5e-2, atol=2.5e-1)

    print("KERNEL_OK")
</pallas_src>

<mosaic_0001>
module attributes {stable_mosaic.version = 11 : i64} {
  func.func @_gemm_t_fused_kernel(%arg0: i32, %arg1: memref<16x99xf32, #tpu.memory_space<vmem>>, %arg2: memref<99x256xf32, #tpu.memory_space<vmem>>, %arg3: memref<16x1xf32, #tpu.memory_space<vmem>>, %arg4: memref<16x1xf32, #tpu.memory_space<vmem>>, %arg5: memref<16x256xf32, #tpu.memory_space<vmem>>) attributes {dimension_semantics = [#tpu.dimension_semantics<parallel>], iteration_bounds = array<i64: 1>, scalar_prefetch = 0 : i64, scratch_operands = 0 : i64, tpu.core_type = #tpu.core_type<tc>, window_params = [{pipeline_mode = #tpu.pipeline_mode<synchronous>, transform_indices = @transform_0, window_bounds = array<i64: 16, 99>}, {transform_indices = @transform_1, window_bounds = array<i64: 99, 256>}, {pipeline_mode = #tpu.pipeline_mode<synchronous>, transform_indices = @transform_2, window_bounds = array<i64: 16, 1>}, {pipeline_mode = #tpu.pipeline_mode<synchronous>, transform_indices = @transform_3, window_bounds = array<i64: 16, 1>}, {transform_indices = @transform_4, window_bounds = array<i64: 16, 256>}]} {
    %c0 = arith.constant 0 : index
    %c0_0 = arith.constant 0 : index
    %0 = vector.load %arg1[%c0, %c0_0] : memref<16x99xf32, #tpu.memory_space<vmem>>, vector<16x99xf32>
    %c0_1 = arith.constant 0 : index
    %c0_2 = arith.constant 0 : index
    %1 = vector.load %arg2[%c0_1, %c0_2] : memref<99x256xf32, #tpu.memory_space<vmem>>, vector<99x256xf32>
    %cst = arith.constant dense<0.000000e+00> : vector<16x256xf32>
    %2 = tpu.matmul %0, %1, %cst {dimension_numbers = #tpu.dot_dimension_numbers<[1], [0], [0], [1], [0, 0, 1, 1], [], []>} : vector<16x99xf32>, vector<99x256xf32>, vector<16x256xf32> -> vector<16x256xf32>
    %c0_3 = arith.constant 0 : index
    %c0_4 = arith.constant 0 : index
    %3 = vector.load %arg3[%c0_3, %c0_4] : memref<16x1xf32, #tpu.memory_space<vmem>>, vector<16x1xf32>
    %4 = vector.broadcast %3 : vector<16x1xf32> to vector<16x256xf32>
    %5 = arith.mulf %2, %4 : vector<16x256xf32>
    %c0_5 = arith.constant 0 : index
    %c0_6 = arith.constant 0 : index
    %6 = vector.load %arg4[%c0_5, %c0_6] : memref<16x1xf32, #tpu.memory_space<vmem>>, vector<16x1xf32>
    %7 = vector.broadcast %6 : vector<16x1xf32> to vector<16x256xf32>
    %8 = arith.addf %5, %7 : vector<16x256xf32>
    %cst_7 = arith.constant 0.000000e+00 : f32
    %9 = vector.broadcast %cst_7 : f32 to vector<16x256xf32>
    %10 = arith.maximumf %8, %9 : vector<16x256xf32>
    %c0_8 = arith.constant 0 : index
    %c0_9 = arith.constant 0 : index
    %11 = vector.load %arg5[%c0_8, %c0_9] : memref<16x256xf32, #tpu.memory_space<vmem>>, vector<16x256xf32>
    tpu.vector_store %arg5[%c0_8, %c0_9], %10 {strides = array<i32>} : memref<16x256xf32, #tpu.memory_space<vmem>>, vector<16x256xf32>,
    return
  }
  func.func @transform_0(%arg0: i32) -> (i32, i32) {
    %c0_i32 = arith.constant 0 : i32
    %c0_i32_0 = arith.constant 0 : i32
    %c0_i32_1 = arith.constant 0 : i32
    return %c0_i32, %c0_i32_0 : i32, i32
  }
  func.func @transform_1(%arg0: i32) -> (i32, i32) {
    %c0_i32 = arith.constant 0 : i32
    %c0_i32_0 = arith.constant 0 : i32
    return %c0_i32, %arg0 : i32, i32
  }
  func.func @transform_2(%arg0: i32) -> (i32, i32) {
    %c0_i32 = arith.constant 0 : i32
    %c0_i32_0 = arith.constant 0 : i32
    %c0_i32_1 = arith.constant 0 : i32
    return %c0_i32, %c0_i32_0 : i32, i32
  }
  func.func @transform_3(%arg0: i32) -> (i32, i32) {
    %c0_i32 = arith.constant 0 : i32
    %c0_i32_0 = arith.constant 0 : i32
    %c0_i32_1 = arith.constant 0 : i32
    return %c0_i32, %c0_i32_0 : i32, i32
  }
  func.func @transform_4(%arg0: i32) -> (i32, i32) {
    %c0_i32 = arith.constant 0 : i32
    %c0_i32_0 = arith.constant 0 : i32
    return %c0_i32, %arg0 : i32, i32
  }
}

module attributes {stable_mosaic.version = 11 : i64} {
  func.func @_gemm_t_fused_kernel(%arg0: i32, %arg1: memref<16x176xf32, #tpu.memory_space<vmem>>, %arg2: memref<176x256xf32, #tpu.memory_space<vmem>>, %arg3: memref<16x1xf32, #tpu.memory_space<vmem>>, %arg4: memref<16x1xf32, #tpu.memory_space<vmem>>, %arg5: memref<16x256xf32, #tpu.memory_space<vmem>>) attributes {dimension_semantics = [#tpu.dimension_semantics<parallel>], iteration_bounds = array<i64: 1>, scalar_prefetch = 0 : i64, scratch_operands = 0 : i64, tpu.core_type = #tpu.core_type<tc>, window_params = [{pipeline_mode = #tpu.pipeline_mode<synchronous>, transform_indices = @transform_0, window_bounds = array<i64: 16, 176>}, {transform_indices = @transform_1, window_bounds = array<i64: 176, 256>}, {pipeline_mode = #tpu.pipeline_mode<synchronous>, transform_indices = @transform_2, window_bounds = array<i64: 16, 1>}, {pipeline_mode = #tpu.pipeline_mode<synchronous>, transform_indices = @transform_3, window_bounds = array<i64: 16, 1>}, {transform_indices = @transform_4, window_bounds = array<i64: 16, 256>}]} {
    %c0 = arith.constant 0 : index
    %c0_0 = arith.constant 0 : index
    %0 = vector.load %arg1[%c0, %c0_0] : memref<16x176xf32, #tpu.memory_space<vmem>>, vector<16x176xf32>
    %c0_1 = arith.constant 0 : index
    %c0_2 = arith.constant 0 : index
    %1 = vector.load %arg2[%c0_1, %c0_2] : memref<176x256xf32, #tpu.memory_space<vmem>>, vector<176x256xf32>
    %cst = arith.constant dense<0.000000e+00> : vector<16x256xf32>
    %2 = tpu.matmul %0, %1, %cst {dimension_numbers = #tpu.dot_dimension_numbers<[1], [0], [0], [1], [0, 0, 1, 1], [], []>} : vector<16x176xf32>, vector<176x256xf32>, vector<16x256xf32> -> vector<16x256xf32>
    %c0_3 = arith.constant 0 : index
    %c0_4 = arith.constant 0 : index
    %3 = vector.load %arg3[%c0_3, %c0_4] : memref<16x1xf32, #tpu.memory_space<vmem>>, vector<16x1xf32>
    %4 = vector.broadcast %3 : vector<16x1xf32> to vector<16x256xf32>
    %5 = arith.mulf %2, %4 : vector<16x256xf32>
    %c0_5 = arith.constant 0 : index
    %c0_6 = arith.constant 0 : index
    %6 = vector.load %arg4[%c0_5, %c0_6] : memref<16x1xf32, #tpu.memory_space<vmem>>, vector<16x1xf32>
    %7 = vector.broadcast %6 : vector<16x1xf32> to vector<16x256xf32>
    %8 = arith.addf %5, %7 : vector<16x256xf32>
    %cst_7 = arith.constant 0.000000e+00 : f32
    %9 = vector.broadcast %cst_7 : f32 to vector<16x256xf32>
    %10 = arith.maximumf %8, %9 : vector<16x256xf32>
    %c0_8 = arith.constant 0 : index
    %c0_9 = arith.constant 0 : index
    %11 = vector.load %arg5[%c0_8, %c0_9] : memref<16x256xf32, #tpu.memory_space<vmem>>, vector<16x256xf32>
    tpu.vector_store %arg5[%c0_8, %c0_9], %10 {strides = array<i32>} : memref<16x256xf32, #tpu.memory_space<vmem>>, vector<16x256xf32>,
    return
  }
  func.func @transform_0(%arg0: i32) -> (i32, i32) {
    %c0_i32 = arith.constant 0 : i32
    %c0_i32_0 = arith.constant 0 : i32
    %c0_i32_1 = arith.constant 0 : i32
    return %c0_i32, %c0_i32_0 : i32, i32
  }
  func.func @transform_1(%arg0: i32) -> (i32, i32) {
    %c0_i32 = arith.constant 0 : i32
    %c0_i32_0 = arith.constant 0 : i32
    return %c0_i32, %arg0 : i32, i32
  }
  func.func @transform_2(%arg0: i32) -> (i32, i32) {
    %c0_i32 = arith.constant 0 : i32
    %c0_i32_0 = arith.constant 0 : i32
    %c0_i32_1 = arith.constant 0 : i32
    return %c0_i32, %c0_i32_0 : i32, i32
  }
  func.func @transform_3(%arg0: i32) -> (i32, i32) {
    %c0_i32 = arith.constant 0 : i32
    %c0_i32_0 = arith.constant 0 : i32
    %c0_i32_1 = arith.constant 0 : i32
    return %c0_i32, %c0_i32_0 : i32, i32
  }
  func.func @transform_4(%arg0: i32) -> (i32, i32) {
    %c0_i32 = arith.constant 0 : i32
    %c0_i32_0 = arith.constant 0 : i32
    return %c0_i32, %arg0 : i32, i32
  }
}

module attributes {stable_mosaic.version = 11 : i64} {
  func.func @_gemm_t_fused_kernel(%arg0: i32, %arg1: memref<16x192xf32, #tpu.memory_space<vmem>>, %arg2: memref<192x128xf32, #tpu.memory_space<vmem>>, %arg3: memref<16x1xf32, #tpu.memory_space<vmem>>, %arg4: memref<16x1xf32, #tpu.memory_space<vmem>>, %arg5: memref<16x128xf32, #tpu.memory_space<vmem>>) attributes {dimension_semantics = [#tpu.dimension_semantics<parallel>], iteration_bounds = array<i64: 1>, scalar_prefetch = 0 : i64, scratch_operands = 0 : i64, tpu.core_type = #tpu.core_type<tc>, window_params = [{pipeline_mode = #tpu.pipeline_mode<synchronous>, transform_indices = @transform_0, window_bounds = array<i64: 16, 192>}, {transform_indices = @transform_1, window_bounds = array<i64: 192, 128>}, {pipeline_mode = #tpu.pipeline_mode<synchronous>, transform_indices = @transform_2, window_bounds = array<i64: 16, 1>}, {pipeline_mode = #tpu.pipeline_mode<synchronous>, transform_indices = @transform_3, window_bounds = array<i64: 16, 1>}, {transform_indices = @transform_4, window_bounds = array<i64: 16, 128>}]} {
    %c0 = arith.constant 0 : index
    %c0_0 = arith.constant 0 : index
    %0 = vector.load %arg1[%c0, %c0_0] : memref<16x192xf32, #tpu.memory_space<vmem>>, vector<16x192xf32>
    %c0_1 = arith.constant 0 : index
    %c0_2 = arith.constant 0 : index
    %1 = vector.load %arg2[%c0_1, %c0_2] : memref<192x128xf32, #tpu.memory_space<vmem>>, vector<192x128xf32>
    %cst = arith.constant dense<0.000000e+00> : vector<16x128xf32>
    %2 = tpu.matmul %0, %1, %cst {dimension_numbers = #tpu.dot_dimension_numbers<[1], [0], [0], [1], [0, 0, 1, 1], [], []>} : vector<16x192xf32>, vector<192x128xf32>, vector<16x128xf32> -> vector<16x128xf32>
    %c0_3 = arith.constant 0 : index
    %c0_4 = arith.constant 0 : index
    %3 = vector.load %arg3[%c0_3, %c0_4] : memref<16x1xf32, #tpu.memory_space<vmem>>, vector<16x1xf32>
    %4 = vector.broadcast %3 : vector<16x1xf32> to vector<16x128xf32>
    %5 = arith.mulf %2, %4 : vector<16x128xf32>
    %c0_5 = arith.constant 0 : index
    %c0_6 = arith.constant 0 : index
    %6 = vector.load %arg4[%c0_5, %c0_6] : memref<16x1xf32, #tpu.memory_space<vmem>>, vector<16x1xf32>
    %7 = vector.broadcast %6 : vector<16x1xf32> to vector<16x128xf32>
    %8 = arith.addf %5, %7 : vector<16x128xf32>
    %cst_7 = arith.constant 0.000000e+00 : f32
    %9 = vector.broadcast %cst_7 : f32 to vector<16x128xf32>
    %10 = arith.maximumf %8, %9 : vector<16x128xf32>
    %c0_8 = arith.constant 0 : index
    %c0_9 = arith.constant 0 : index
    %11 = vector.load %arg5[%c0_8, %c0_9] : memref<16x128xf32, #tpu.memory_space<vmem>>, vector<16x128xf32>
    tpu.vector_store %arg5[%c0_8, %c0_9], %10 {strides = array<i32>} : memref<16x128xf32, #tpu.memory_space<vmem>>, vector<16x128xf32>,
    return
  }
  func.func @transform_0(%arg0: i32) -> (i32, i32) {
    %c0_i32 = arith.constant 0 : i32
    %c0_i32_0 = arith.constant 0 : i32
    %c0_i32_1 = arith.constant 0 : i32
    return %c0_i32, %c0_i32_0 : i32, i32
  }
  func.func @transform_1(%arg0: i32) -> (i32, i32) {
    %c0_i32 = arith.constant 0 : i32
    %c0_i32_0 = arith.constant 0 : i32
    return %c0_i32, %arg0 : i32, i32
  }
  func.func @transform_2(%arg0: i32) -> (i32, i32) {
    %c0_i32 = arith.constant 0 : i32
    %c0_i32_0 = arith.constant 0 : i32
    %c0_i32_1 = arith.constant 0 : i32
    return %c0_i32, %c0_i32_0 : i32, i32
  }
  func.func @transform_3(%arg0: i32) -> (i32, i32) {
    %c0_i32 = arith.constant 0 : i32
    %c0_i32_0 = arith.constant 0 : i32
    %c0_i32_1 = arith.constant 0 : i32
    return %c0_i32, %c0_i32_0 : i32, i32
  }
  func.func @transform_4(%arg0: i32) -> (i32, i32) {
    %c0_i32 = arith.constant 0 : i32
    %c0_i32_0 = arith.constant 0 : i32
    return %c0_i32, %arg0 : i32, i32
  }
}

module attributes {stable_mosaic.version = 11 : i64} {
  func.func @_gemm_t_fused_kernel(%arg0: i32, %arg1: memref<10x512xf32, #tpu.memory_space<vmem>>, %arg2: memref<512x128xf32, #tpu.memory_space<vmem>>, %arg3: memref<10x1xf32, #tpu.memory_space<vmem>>, %arg4: memref<10x1xf32, #tpu.memory_space<vmem>>, %arg5: memref<10x128xf32, #tpu.memory_space<vmem>>) attributes {dimension_semantics = [#tpu.dimension_semantics<parallel>], iteration_bounds = array<i64: 1>, scalar_prefetch = 0 : i64, scratch_operands = 0 : i64, tpu.core_type = #tpu.core_type<tc>, window_params = [{pipeline_mode = #tpu.pipeline_mode<synchronous>, transform_indices = @transform_0, window_bounds = array<i64: 10, 512>}, {transform_indices = @transform_1, window_bounds = array<i64: 512, 128>}, {pipeline_mode = #tpu.pipeline_mode<synchronous>, transform_indices = @transform_2, window_bounds = array<i64: 10, 1>}, {pipeline_mode = #tpu.pipeline_mode<synchronous>, transform_indices = @transform_3, window_bounds = array<i64: 10, 1>}, {transform_indices = @transform_4, window_bounds = array<i64: 10, 128>}]} {
    %c0 = arith.constant 0 : index
    %c0_0 = arith.constant 0 : index
    %0 = vector.load %arg1[%c0, %c0_0] : memref<10x512xf32, #tpu.memory_space<vmem>>, vector<10x512xf32>
    %c0_1 = arith.constant 0 : index
    %c0_2 = arith.constant 0 : index
    %1 = vector.load %arg2[%c0_1, %c0_2] : memref<512x128xf32, #tpu.memory_space<vmem>>, vector<512x128xf32>
    %cst = arith.constant dense<0.000000e+00> : vector<10x128xf32>
    %2 = tpu.matmul %0, %1, %cst {dimension_numbers = #tpu.dot_dimension_numbers<[1], [0], [0], [1], [0, 0, 1, 1], [], []>} : vector<10x512xf32>, vector<512x128xf32>, vector<10x128xf32> -> vector<10x128xf32>
    %c0_3 = arith.constant 0 : index
    %c0_4 = arith.constant 0 : index
    %3 = vector.load %arg3[%c0_3, %c0_4] : memref<10x1xf32, #tpu.memory_space<vmem>>, vector<10x1xf32>
    %4 = vector.broadcast %3 : vector<10x1xf32> to vector<10x128xf32>
    %5 = arith.mulf %2, %4 : vector<10x128xf32>
    %c0_5 = arith.constant 0 : index
    %c0_6 = arith.constant 0 : index
    %6 = vector.load %arg4[%c0_5, %c0_6] : memref<10x1xf32, #tpu.memory_space<vmem>>, vector<10x1xf32>
    %7 = vector.broadcast %6 : vector<10x1xf32> to vector<10x128xf32>
    %8 = arith.addf %5, %7 : vector<10x128xf32>
    %c0_7 = arith.constant 0 : index
    %c0_8 = arith.constant 0 : index
    %9 = vector.load %arg5[%c0_7, %c0_8] : memref<10x128xf32, #tpu.memory_space<vmem>>, vector<10x128xf32>
    tpu.vector_store %arg5[%c0_7, %c0_8], %8 {strides = array<i32>} : memref<10x128xf32, #tpu.memory_space<vmem>>, vector<10x128xf32>,
    return
  }
  func.func @transform_0(%arg0: i32) -> (i32, i32) {
    %c0_i32 = arith.constant 0 : i32
    %c0_i32_0 = arith.constant 0 : i32
    %c0_i32_1 = arith.constant 0 : i32
    return %c0_i32, %c0_i32_0 : i32, i32
  }
  func.func @transform_1(%arg0: i32) -> (i32, i32) {
    %c0_i32 = arith.constant 0 : i32
    %c0_i32_0 = arith.constant 0 : i32
    return %c0_i32, %arg0 : i32, i32
  }
  func.func @transform_2(%arg0: i32) -> (i32, i32) {
    %c0_i32 = arith.constant 0 : i32
    %c0_i32_0 = arith.constant 0 : i32
    %c0_i32_1 = arith.constant 0 : i32
    return %c0_i32, %c0_i32_0 : i32, i32
  }
  func.func @transform_3(%arg0: i32) -> (i32, i32) {
    %c0_i32 = arith.constant 0 : i32
    %c0_i32_0 = arith.constant 0 : i32
    %c0_i32_1 = arith.constant 0 : i32
    return %c0_i32, %c0_i32_0 : i32, i32
  }
  func.func @transform_4(%arg0: i32) -> (i32, i32) {
    %c0_i32 = arith.constant 0 : i32
    %c0_i32_0 = arith.constant 0 : i32
    return %c0_i32, %arg0 : i32, i32
  }
}

</mosaic_0001>

<bundles_post_ra>
// kernel: nm3dcnn_forward.5
= control target key start
LH: loop header
LB: loop body
LE: loop exit
PB: predicated region body
PF: predicated region fallthrough
CT: control target
= control target key end

     0   :  { %vm52_vm0 = vcmask 1042432   ;;  %v184_v3 = vmov 0   ;;  %vm45_vm1 = vcmask 809984   ;;  %s318_s1 = inlined_call_operand.vmem [shape: f32[99,256], index: 1, kind: input, shape index: {}]   ;;  %s319_s0 = inlined_call_operand.vmem [shape: f32[16,99], index: 0, kind: input, shape index: {}]   ;;  %s320_s2 = inlined_call_operand.vmem [shape: f32[16,1], index: 2, kind: input, shape index: {}]   ;;  %s321_s3 = inlined_call_operand.vmem [shape: f32[16,1], index: 3, kind: input, shape index: {}]   ;;  %s322_s4 = inlined_call_operand.vmem [shape: f32[16,256], index: 4, kind: output, shape index: {}]  }
   0x1   :  { %v43_v0 = vld [vmem:[%s318_s1 + $0xc0] sm:$0x7]  ;;  %v44_v1 = vld [vmem:[%s318_s1 + $0xc8] sm:$0x7]  ;;  %v41_v2 = vld [vmem:[%s318_s1 + $0xb0] sm:$0xff]  ;;  %182 = vset.pattern.permute.xlu0 %v184_v3  ;;  %183 = vset.pattern.permute.xlu1 %v184_v3 }
   0x2   :  { %149 = vmatpush.msk.msra.mxu0 %vm52_vm0, %v43_v0  ;;  %155 = vmatpush.msk.msra.mxu2 %vm52_vm0, %v43_v0  ;;  %v42_v4 = vld [vmem:[%s318_s1 + $0xb8] sm:$0xff]  ;;  %v39_v5 = vld [vmem:[%s318_s1 + $0xa0] sm:$0xff]  ;;  %v40_v6 = vld [vmem:[%s318_s1 + $0xa8] sm:$0xff] }
   0x3   :  { %152 = vmatpush.msk.msra.mxu1 %vm52_vm0, %v44_v1  ;;  %168 = vmatpush.msk.msra.mxu3 %vm52_vm0, %v44_v1  ;;  %v37_v7 = vld [vmem:[%s318_s1 + $0x90] sm:$0xff]  ;;  %v38_v8 = vld [vmem:[%s318_s1 + $0x98] sm:$0xff]  ;;  %v35_v9 = vld [vmem:[%s318_s1 + $0x80] sm:$0xff] }
   0x4   :  { %63 = vmatpush.msra.mxu0 %v41_v2  ;;  %156 = vmatpush.msra.mxu2 %v41_v2  ;;  %v36_v10 = vld [vmem:[%s318_s1 + $0x88] sm:$0xff]  ;;  %v33_v11 = vld [vmem:[%s318_s1 + $0x70] sm:$0xff]  ;;  %v34_v12 = vld [vmem:[%s318_s1 + $0x78] sm:$0xff] }
   0x5   :  { %86 = vmatpush.msra.mxu1 %v42_v4  ;;  %169 = vmatpush.msra.mxu3 %v42_v4  ;;  %v31_v13 = vld [vmem:[%s318_s1 + $0x60] sm:$0xff]  ;;  %v32_v14 = vld [vmem:[%s318_s1 + $0x68] sm:$0xff]  ;;  %v29_v15 = vld [vmem:[%s318_s1 + $0x50] sm:$0xff] }
   0x6   :  { %64 = vmatpush.msra.mxu0 %v39_v5  ;;  %157 = vmatpush.msra.mxu2 %v39_v5  ;;  %v30_v16 = vld [vmem:[%s318_s1 + $0x58] sm:$0xff]  ;;  %v27_v17 = vld [vmem:[%s318_s1 + $0x40] sm:$0xff]  ;;  %v28_v18 = vld [vmem:[%s318_s1 + $0x48] sm:$0xff] }
   0x7   :  { %87 = vmatpush.msra.mxu1 %v40_v6  ;;  %170 = vmatpush.msra.mxu3 %v40_v6  ;;  %v25_v19 = vld [vmem:[%s318_s1 + $0x30] sm:$0xff]  ;;  %v26_v20 = vld [vmem:[%s318_s1 + $0x38] sm:$0xff]  ;;  %v23_v21 = vld [vmem:[%s318_s1 + $0x20] sm:$0xff] }
   0x8   :  { %65 = vmatpush.msra.mxu0 %v37_v7  ;;  %158 = vmatpush.msra.mxu2 %v37_v7  ;;  %v24_v22 = vld [vmem:[%s318_s1 + $0x28] sm:$0xff]  ;;  %v21_v23 = vld [vmem:[%s318_s1 + $0x10] sm:$0xff]  ;;  %v22_v24 = vld [vmem:[%s318_s1 + $0x18] sm:$0xff] }
   0x9   :  { %88 = vmatpush.msra.mxu1 %v38_v8  ;;  %171 = vmatpush.msra.mxu3 %v38_v8  ;;  %v19_v25 = vld [vmem:[%s318_s1] sm:$0xff]  ;;  %v20_v26 = vld [vmem:[%s318_s1 + $0x8] sm:$0xff] }
   0xa   :  { %66 = vmatpush.msra.mxu0 %v35_v9  ;;  %159 = vmatpush.msra.mxu2 %v35_v9  ;;  %v17_v27 = vld [vmem:[%s319_s0] sm:$0xff]  ;;  %v18_v28 = vld [vmem:[%s319_s0 + $0x8] sm:$0xff] }
   0xb   :  { %89 = vmatpush.msra.mxu1 %v36_v10  ;;  %172 = vmatpush.msra.mxu3 %v36_v10  ;;  %v105_v29 = vld [vmem:[%s320_s2] sm:$0xff]  ;;  %v106_v31 = vld [vmem:[%s320_s2 + $0x8] sm:$0xff] }
   0xc   :  { %67 = vmatpush.msra.mxu0 %v33_v11  ;;  %160 = vmatpush.msra.mxu2 %v33_v11  ;;  %v121_v30 = vld [vmem:[%s321_s3] sm:$0xff]  ;;  %v122_v32 = vld [vmem:[%s321_s3 + $0x8] sm:$0xff] }
   0xd   :  { %90 = vmatpush.msra.mxu1 %v34_v12  ;;  %173 = vmatpush.msra.mxu3 %v34_v12 }
   0xe   :  { %68 = vmatpush.msra.mxu0 %v31_v13  ;;  %161 = vmatpush.msra.mxu2 %v31_v13 }
   0xf   :  { %91 = vmatpush.msra.mxu1 %v32_v14  ;;  %174 = vmatpush.msra.mxu3 %v32_v14 }
  0x10   :  { %69 = vmatpush.msra.mxu0 %v29_v15  ;;  %162 = vmatpush.msra.mxu2 %v29_v15 }
  0x11   :  { %92 = vmatpush.msra.mxu1 %v30_v16  ;;  %175 = vmatpush.msra.mxu3 %v30_v16 }
  0x12   :  { %70 = vmatpush.msra.mxu0 %v27_v17  ;;  %163 = vmatpush.msra.mxu2 %v27_v17 }
  0x13   :  { %93 = vmatpush.msra.mxu1 %v28_v18  ;;  %176 = vmatpush.msra.mxu3 %v28_v18 }
  0x14   :  { %71 = vmatpush.msra.mxu0 %v25_v19  ;;  %164 = vmatpush.msra.mxu2 %v25_v19 }
  0x15   :  { %94 = vmatpush.msra.mxu1 %v26_v20  ;;  %177 = vmatpush.msra.mxu3 %v26_v20 }
  0x16   :  { %72 = vmatpush.msra.mxu0 %v23_v21  ;;  %165 = vmatpush.msra.mxu2 %v23_v21 }
  0x17   :  { %95 = vmatpush.msra.mxu1 %v24_v22  ;;  %178 = vmatpush.msra.mxu3 %v24_v22 }
  0x18   :  { %73 = vmatpush.msra.mxu0 %v21_v23  ;;  %166 = vmatpush.msra.mxu2 %v21_v23 }
  0x19   :  { %96 = vmatpush.msra.mxu1 %v22_v24  ;;  %179 = vmatpush.msra.mxu3 %v22_v24 }
  0x1a   :  { %74 = vmatpush.msra.mxu0 %v19_v25  ;;  %167 = vmatpush.msra.mxu2 %v19_v25 }
  0x1b   :  { %97 = vmatpush.msra.mxu1 %v20_v26  ;;  %180 = vmatpush.msra.mxu3 %v20_v26 }
  0x1c   :  { %150 = vmatmul.msk.f32.vlgmr.msra.gmra.mxu0 %vm45_vm1, %v17_v27  ;;  %151 = vmatmul.msk.f32.vlgmr.msra.gmra.mxu2 %vm45_vm1, %v18_v28 }
  0x1d   :  { %153 = vmatmul.msk.f32.vlgmr.msra.gmra.mxu1 %vm45_vm1, %v17_v27  ;;  %154 = vmatmul.msk.f32.vlgmr.msra.gmra.mxu3 %vm45_vm1, %v18_v28 }
  0x1e   :  { %109 = vperm.xlu0 %182, %v105_v29   ;;  %125 = vperm.xlu1 %183, %v121_v30  }
  0x26   :  { %114 = vperm.xlu0 %182, %v106_v31   ;;  %130 = vperm.xlu1 %183, %v122_v32  }
  0x90   :  { %v110_v33 = vpop.permute.xlu0 %109  ;;  %v126_v34 = vpop.permute.xlu1 %125 }
  0x98   :  { %v115_v42 = vpop.permute.xlu0 %114  ;;  %v131_v47 = vpop.permute.xlu1 %130 }
  0x99   :  { %v76_v35 = vpop.f32.mrf.mxu0 }
  0x9a   :  { %v117_v36 = vmul.f32 %v110_v33, %v76_v35  ;;  %v99_v37 = vpop.f32.mrf.mxu1 }
  0x9b   :  { %v118_v38 = vmul.f32 %v110_v33, %v99_v37 }
  0x9c   :  { %v133_v39 = vadd.f32 %v126_v34, %v117_v36 }
  0x9d   :  { %v134_v40 = vadd.f32 %v126_v34, %v118_v38 }
  0x9e   :  { %v137_v41 = vmax.f32 %v133_v39, 0.0 }
  0x9f   :  { %v138_v43 = vmax.f32 %v134_v40, 0.0  ;;  %v79_v44 = vpop.f32.mrf.mxu2 }
  0xa0   :  { %141 = vst [vmem:[%s322_s4] sm:$0xff] %v137_v41  ;;  %v119_v45 = vmul.f32 %v115_v42, %v79_v44  ;;  %v102_v46 = vpop.f32.mrf.mxu3 }
  0xa1   :  { %142 = vst [vmem:[%s322_s4 + $0x8] sm:$0xff] %v138_v43  ;;  %v120_v48 = vmul.f32 %v115_v42, %v102_v46 }
  0xa2   :  { %v135_v49 = vadd.f32 %v131_v47, %v119_v45 }
  0xa3   :  { %v136_v50 = vadd.f32 %v131_v47, %v120_v48 }
  0xa4   :  { %v139_v51 = vmax.f32 %v135_v49, 0.0 }
  0xa5   :  { %v140_v52 = vmax.f32 %v136_v50, 0.0 }
  0xa6   :  { %143 = vst [vmem:[%s322_s4 + $0x10] sm:$0xff] %v139_v51 }
  0xa7   :  { %144 = vst [vmem:[%s322_s4 + $0x18] sm:$0xff] %v140_v52 }

// kernel: nm3dcnn_forward.6
= control target key start
LH: loop header
LB: loop body
LE: loop exit
PB: predicated region body
PF: predicated region fallthrough
CT: control target
= control target key end

     0   :  { %vm65_vm0 = vcmask 392192   ;;  %v215_v41 = vmov 0   ;;  %s413_s1 = inlined_call_operand.vmem [shape: f32[176,256], index: 1, kind: input, shape index: {}]   ;;  %s414_s0 = inlined_call_operand.vmem [shape: f32[16,176], index: 0, kind: input, shape index: {}]   ;;  %s415_s2 = inlined_call_operand.vmem [shape: f32[16,1], index: 2, kind: input, shape index: {}]   ;;  %s416_s3 = inlined_call_operand.vmem [shape: f32[16,1], index: 3, kind: input, shape index: {}]   ;;  %s417_s4 = inlined_call_operand.vmem [shape: f32[16,256], index: 4, kind: output, shape index: {}]  }
   0x1   :  { %v51_v0 = vld [vmem:[%s413_s1 + $0xf0] sm:$0xff]  ;;  %v52_v1 = vld [vmem:[%s413_s1 + $0xf8] sm:$0xff]  ;;  %v49_v2 = vld [vmem:[%s413_s1 + $0xe0] sm:$0xff]  ;;  %213 = vset.pattern.permute.xlu0 %v215_v41  ;;  %214 = vset.pattern.permute.xlu1 %v215_v41 }
   0x2   :  { %72 = vmatpush.msra.mxu0 %v51_v0  ;;  %118 = vmatpush.msra.mxu2 %v52_v1  ;;  %v50_v3 = vld [vmem:[%s413_s1 + $0xe8] sm:$0xff]  ;;  %v47_v4 = vld [vmem:[%s413_s1 + $0xd0] sm:$0xff]  ;;  %v48_v5 = vld [vmem:[%s413_s1 + $0xd8] sm:$0xff] }
   0x3   :  { %v45_v6 = vld [vmem:[%s413_s1 + $0xc0] sm:$0xff]  ;;  %v46_v7 = vld [vmem:[%s413_s1 + $0xc8] sm:$0xff]  ;;  %v43_v8 = vld [vmem:[%s413_s1 + $0xb0] sm:$0xff] }
   0x4   :  { %73 = vmatpush.msra.mxu0 %v49_v2  ;;  %119 = vmatpush.msra.mxu2 %v50_v3  ;;  %v44_v9 = vld [vmem:[%s413_s1 + $0xb8] sm:$0xff]  ;;  %v63_v10 = vld [vmem:[%s413_s1 + $0x150] sm:$0xff]  ;;  %v41_v12 = vld [vmem:[%s413_s1 + $0xa0] sm:$0xff] }
   0x5   :  { %v64_v11 = vld [vmem:[%s413_s1 + $0x158] sm:$0xff]  ;;  %v42_v13 = vld [vmem:[%s413_s1 + $0xa8] sm:$0xff]  ;;  %105 = vmatpush.msra.mxu1 %v63_v10  ;;  %v61_v14 = vld [vmem:[%s413_s1 + $0x140] sm:$0xff] }
   0x6   :  { %74 = vmatpush.msra.mxu0 %v47_v4  ;;  %120 = vmatpush.msra.mxu2 %v48_v5  ;;  %v62_v15 = vld [vmem:[%s413_s1 + $0x148] sm:$0xff]  ;;  %v59_v16 = vld [vmem:[%s413_s1 + $0x130] sm:$0xff]  ;;  %v40_v18 = vld [vmem:[%s413_s1 + $0x98] sm:$0xff] }
   0x7   :  { %151 = vmatpush.msra.mxu3 %v64_v11  ;;  %v39_v17 = vld [vmem:[%s413_s1 + $0x90] sm:$0xff]  ;;  %106 = vmatpush.msra.mxu1 %v61_v14  ;;  %v60_v19 = vld [vmem:[%s413_s1 + $0x138] sm:$0xff]  ;;  %v57_v20 = vld [vmem:[%s413_s1 + $0x120] sm:$0xff] }
   0x8   :  { %75 = vmatpush.msra.mxu0 %v45_v6  ;;  %121 = vmatpush.msra.mxu2 %v46_v7  ;;  %v58_v21 = vld [vmem:[%s413_s1 + $0x128] sm:$0xff]  ;;  %v37_v22 = vld [vmem:[%s413_s1 + $0x80] sm:$0xff]  ;;  %v55_v24 = vld [vmem:[%s413_s1 + $0x110] sm:$0xff] }
   0x9   :  { %152 = vmatpush.msra.mxu3 %v62_v15  ;;  %v38_v23 = vld [vmem:[%s413_s1 + $0x88] sm:$0xff]  ;;  %107 = vmatpush.msra.mxu1 %v59_v16  ;;  %v56_v25 = vld [vmem:[%s413_s1 + $0x118] sm:$0xff]  ;;  %v35_v26 = vld [vmem:[%s413_s1 + $0x70] sm:$0xff] }
   0xa   :  { %76 = vmatpush.msra.mxu0 %v43_v8  ;;  %122 = vmatpush.msra.mxu2 %v44_v9  ;;  %v36_v27 = vld [vmem:[%s413_s1 + $0x78] sm:$0xff]  ;;  %v53_v28 = vld [vmem:[%s413_s1 + $0x100] sm:$0xff]  ;;  %v54_v29 = vld [vmem:[%s413_s1 + $0x108] sm:$0xff] }
   0xb   :  { %153 = vmatpush.msra.mxu3 %v60_v19  ;;  %108 = vmatpush.msra.mxu1 %v57_v20  ;;  %v33_v30 = vld [vmem:[%s413_s1 + $0x60] sm:$0xff]  ;;  %v34_v31 = vld [vmem:[%s413_s1 + $0x68] sm:$0xff]  ;;  %v31_v33 = vld [vmem:[%s413_s1 + $0x50] sm:$0xff] }
   0xc   :  { %77 = vmatpush.msra.mxu0 %v41_v12  ;;  %123 = vmatpush.msra.mxu2 %v42_v13  ;;  %v18_v32 = vld [vmem:[%s414_s0 + $0x8] sm:$0xff]  ;;  %v32_v34 = vld [vmem:[%s413_s1 + $0x58] sm:$0xff]  ;;  %v29_v35 = vld [vmem:[%s413_s1 + $0x40] sm:$0xff] }
   0xd   :  { %154 = vmatpush.msra.mxu3 %v58_v21  ;;  %109 = vmatpush.msra.mxu1 %v55_v24  ;;  %v30_v36 = vld [vmem:[%s413_s1 + $0x48] sm:$0xff]  ;;  %v164_v37 = vld [vmem:[%s415_s2] sm:$0xff]  ;;  %v27_v39 = vld [vmem:[%s413_s1 + $0x30] sm:$0xff] }
   0xe   :  { %78 = vmatpush.msra.mxu0 %v39_v17  ;;  %124 = vmatpush.msra.mxu2 %v40_v18  ;;  %v180_v38 = vld [vmem:[%s416_s3] sm:$0xff]  ;;  %v28_v40 = vld [vmem:[%s413_s1 + $0x38] sm:$0xff]  ;;  %v26_v43 = vld [vmem:[%s413_s1 + $0x28] sm:$0xff] }
   0xf   :  { %155 = vmatpush.msra.mxu3 %v56_v25  ;;  %110 = vmatpush.msra.mxu1 %v53_v28  ;;  %v25_v42 = vld [vmem:[%s413_s1 + $0x20] sm:$0xff]  ;;  %v20_v44 = vld [vmem:[%s414_s0 + $0x18] sm:$0xff]  ;;  %v23_v45 = vld [vmem:[%s413_s1 + $0x10] sm:$0xff] }
  0x10   :  { %79 = vmatpush.msra.mxu0 %v37_v22  ;;  %125 = vmatpush.msra.mxu2 %v38_v23  ;;  %v24_v46 = vld [vmem:[%s413_s1 + $0x18] sm:$0xff]  ;;  %v21_v47 = vld [vmem:[%s413_s1] sm:$0xff]  ;;  %v22_v48 = vld [vmem:[%s413_s1 + $0x8] sm:$0xff] }
  0x11   :  { %156 = vmatpush.msra.mxu3 %v54_v29  ;;  %208 = vmatmul.msk.f32.vlgmr.msra.gmra.mxu1 %vm65_vm0, %v18_v32  ;;  %v17_v49 = vld [vmem:[%s414_s0] sm:$0xff]  ;;  %v165_v50 = vld [vmem:[%s415_s2 + $0x8] sm:$0xff]  ;;  %v19_v52 = vld [vmem:[%s414_s0 + $0x10] sm:$0xff] }
  0x12   :  { %80 = vmatpush.msra.mxu0 %v35_v26  ;;  %126 = vmatpush.msra.mxu2 %v36_v27  ;;  %v181_v51 = vld [vmem:[%s416_s3 + $0x8] sm:$0xff] }
  0x13   :  { %210 = vmatmul.msk.f32.vlgmr.msra.gmra.mxu3 %vm65_vm0, %v18_v32  ;;  %168 = vperm.xlu0 %213, %v164_v37  }
  0x14   :  { %81 = vmatpush.msra.mxu0 %v33_v30  ;;  %127 = vmatpush.msra.mxu2 %v34_v31 }
  0x15   :  { %184 = vperm.xlu1 %214, %v180_v38  }
  0x16   :  { %82 = vmatpush.msra.mxu0 %v31_v33  ;;  %128 = vmatpush.msra.mxu2 %v32_v34 }
  0x18   :  { %83 = vmatpush.msra.mxu0 %v29_v35  ;;  %129 = vmatpush.msra.mxu2 %v30_v36 }
  0x19   :  { %209 = vmatmul.msk.f32.gmra.mxu1 %vm65_vm0, %v20_v44 }
  0x1a   :  { %84 = vmatpush.msra.mxu0 %v27_v39  ;;  %130 = vmatpush.msra.mxu2 %v28_v40 }
  0x1b   :  { %211 = vmatmul.msk.f32.gmra.mxu3 %vm65_vm0, %v20_v44  ;;  %173 = vperm.xlu0 %213, %v165_v50  }
  0x1c   :  { %85 = vmatpush.msra.mxu0 %v25_v42  ;;  %131 = vmatpush.msra.mxu2 %v26_v43 }
  0x1d   :  { %189 = vperm.xlu1 %214, %v181_v51  }
  0x1e   :  { %86 = vmatpush.msra.mxu0 %v23_v45  ;;  %132 = vmatpush.msra.mxu2 %v24_v46 }
  0x20   :  { %87 = vmatpush.msra.mxu0 %v21_v47  ;;  %133 = vmatpush.msra.mxu2 %v22_v48 }
  0x21   :  { %88 = vmatmul.f32.vlgmr.msra.gmra.mxu0 %v17_v49  ;;  %134 = vmatmul.f32.vlgmr.msra.gmra.mxu2 %v17_v49 }
  0x29   :  { %91 = vmatmul.f32.gmra.mxu0 %v19_v52  ;;  %137 = vmatmul.f32.gmra.mxu2 %v19_v52 }
  0x85   :  { %v169_v54 = vpop.permute.xlu0 %168 }
  0x87   :  { %v185_v57 = vpop.permute.xlu1 %184 }
  0x8d   :  { %v174_v4 = vpop.permute.xlu0 %173 }
  0x8e   :  { %v112_v53 = vpop.f32.mrf.mxu1 }
  0x8f   :  { %v190_v7 = vpop.permute.xlu1 %189 }
  0x96   :  { %v158_v58 = vpop.f32.mrf.mxu3  ;;  %v115_v62 = vpop.f32.mrf.mxu1 }
  0x9e   :  { %v89_v55 = vpop.f32.mrf.mxu0  ;;  %v161_v8 = vpop.f32.mrf.mxu3 }
  0x9f   :  { %v113_v56 = vadd.f32 %v112_v53, %v89_v55 }
  0xa1   :  { %v176_v59 = vmul.f32 %v169_v54, %v113_v56 }
  0xa3   :  { %v192_v60 = vadd.f32 %v185_v57, %v176_v59 }
  0xa4   :  { %v135_v61 = vpop.f32.mrf.mxu2 }
  0xa5   :  { %v196_v63 = vmax.f32 %v192_v60, 0.0  ;;  %v159_v0 = vadd.f32 %v158_v58, %v135_v61 }
  0xa6   :  { %v92_v1 = vpop.f32.mrf.mxu0 }
  0xa7   :  { %200 = vst [vmem:[%s417_s4] sm:$0xff] %v196_v63  ;;  %v177_v2 = vmul.f32 %v169_v54, %v159_v0  ;;  %v116_v3 = vadd.f32 %v115_v62, %v92_v1 }
  0xa9   :  { %v193_v5 = vadd.f32 %v185_v57, %v177_v2  ;;  %v178_v6 = vmul.f32 %v174_v4, %v116_v3 }
  0xab   :  { %v197_v9 = vmax.f32 %v193_v5, 0.0  ;;  %v194_v10 = vadd.f32 %v190_v7, %v178_v6 }
  0xac   :  { %v138_v11 = vpop.f32.mrf.mxu2 }
  0xad   :  { %201 = vst [vmem:[%s417_s4 + $0x8] sm:$0xff] %v197_v9  ;;  %v198_v12 = vmax.f32 %v194_v10, 0.0  ;;  %v162_v13 = vadd.f32 %v161_v8, %v138_v11 }
  0xaf   :  { %202 = vst [vmem:[%s417_s4 + $0x10] sm:$0xff] %v198_v12  ;;  %v179_v14 = vmul.f32 %v174_v4, %v162_v13 }
  0xb1   :  { %v195_v15 = vadd.f32 %v190_v7, %v179_v14 }
  0xb3   :  { %v199_v16 = vmax.f32 %v195_v15, 0.0 }
  0xb5   :  { %203 = vst [vmem:[%s417_s4 + $0x18] sm:$0xff] %v199_v16 }

// kernel: nm3dcnn_forward.8
= control target key start
LH: loop header
LB: loop body
LE: loop exit
PB: predicated region body
PF: predicated region fallthrough
CT: control target
= control target key end

     0   :  { %v155_v4 = vmov 0   ;;  %vm45_vm0 = vcmask 523264   ;;  %s285_s1 = inlined_call_operand.vmem [shape: f32[192,128], index: 1, kind: input, shape index: {}]   ;;  %s286_s2 = inlined_call_operand.vmem [shape: f32[16,1], index: 2, kind: input, shape index: {}]   ;;  %s287_s3 = inlined_call_operand.vmem [shape: f32[16,1], index: 3, kind: input, shape index: {}]   ;;  %s288_s0 = inlined_call_operand.vmem [shape: f32[16,192], index: 0, kind: input, shape index: {}]   ;;  %s289_s4 = inlined_call_operand.vmem [shape: f32[16,128], index: 4, kind: output, shape index: {}]  }
   0x1   :  { %v36_v0 = vld [vmem:[%s285_s1 + $0x78] sm:$0xff]  ;;  %v35_v1 = vld [vmem:[%s285_s1 + $0x70] sm:$0xff]  ;;  %v34_v2 = vld [vmem:[%s285_s1 + $0x68] sm:$0xff]  ;;  %153 = vset.pattern.permute.xlu0 %v155_v4  ;;  %154 = vset.pattern.permute.xlu1 %v155_v4 }
   0x2   :  { %52 = vmatpush.msra.mxu0 %v36_v0  ;;  %136 = vmatpush.msra.mxu2 %v36_v0  ;;  %v44_v3 = vld [vmem:[%s285_s1 + $0xb8] sm:$0xff]  ;;  %v43_v5 = vld [vmem:[%s285_s1 + $0xb0] sm:$0xff]  ;;  %v33_v6 = vld [vmem:[%s285_s1 + $0x60] sm:$0xff] }
   0x3   :  { %83 = vmatpush.msra.mxu1 %v44_v3  ;;  %v42_v7 = vld [vmem:[%s285_s1 + $0xa8] sm:$0xff]  ;;  %v32_v8 = vld [vmem:[%s285_s1 + $0x58] sm:$0xff]  ;;  %v41_v9 = vld [vmem:[%s285_s1 + $0xa0] sm:$0xff] }
   0x4   :  { %53 = vmatpush.msra.mxu0 %v35_v1  ;;  %137 = vmatpush.msra.mxu2 %v35_v1  ;;  %v31_v10 = vld [vmem:[%s285_s1 + $0x50] sm:$0xff]  ;;  %v40_v11 = vld [vmem:[%s285_s1 + $0x98] sm:$0xff]  ;;  %v98_v12 = vld [vmem:[%s286_s2] sm:$0xff] }
   0x5   :  { %84 = vmatpush.msra.mxu1 %v43_v5  ;;  %v112_v13 = vld [vmem:[%s287_s3] sm:$0xff]  ;;  %v30_v14 = vld [vmem:[%s285_s1 + $0x48] sm:$0xff]  ;;  %102 = vperm.xlu0 %153, %v98_v12   ;;  %v39_v15 = vld [vmem:[%s285_s1 + $0x90] sm:$0xff] }
   0x6   :  { %54 = vmatpush.msra.mxu0 %v34_v2  ;;  %138 = vmatpush.msra.mxu2 %v34_v2  ;;  %v29_v16 = vld [vmem:[%s285_s1 + $0x40] sm:$0xff]  ;;  %v38_v17 = vld [vmem:[%s285_s1 + $0x88] sm:$0xff]  ;;  %v28_v18 = vld [vmem:[%s285_s1 + $0x38] sm:$0xff] }
   0x7   :  { %85 = vmatpush.msra.mxu1 %v42_v7  ;;  %116 = vperm.xlu1 %154, %v112_v13   ;;  %v37_v19 = vld [vmem:[%s285_s1 + $0x80] sm:$0xff]  ;;  %v99_v20 = vld [vmem:[%s286_s2 + $0x8] sm:$0xff]  ;;  %v27_v21 = vld [vmem:[%s285_s1 + $0x30] sm:$0xff] }
   0x8   :  { %55 = vmatpush.msra.mxu0 %v33_v6  ;;  %139 = vmatpush.msra.mxu2 %v33_v6  ;;  %v18_v22 = vld [vmem:[%s288_s0 + $0x8] sm:$0xff]  ;;  %v25_v25 = vld [vmem:[%s285_s1 + $0x20] sm:$0xff]  ;;  %v24_v26 = vld [vmem:[%s285_s1 + $0x18] sm:$0xff] }
   0x9   :  { %86 = vmatpush.msra.mxu1 %v41_v9  ;;  %v113_v23 = vld [vmem:[%s287_s3 + $0x8] sm:$0xff]  ;;  %v23_v27 = vld [vmem:[%s285_s1 + $0x10] sm:$0xff]  ;;  %v20_v28 = vld [vmem:[%s288_s0 + $0x18] sm:$0xff] }
   0xa   :  { %56 = vmatpush.msra.mxu0 %v32_v8  ;;  %140 = vmatpush.msra.mxu2 %v32_v8  ;;  %v26_v24 = vld [vmem:[%s285_s1 + $0x28] sm:$0xff]  ;;  %v21_v30 = vld [vmem:[%s285_s1] sm:$0xff]  ;;  %v19_v32 = vld [vmem:[%s288_s0 + $0x10] sm:$0xff] }
   0xb   :  { %87 = vmatpush.msra.mxu1 %v40_v11  ;;  %v22_v29 = vld [vmem:[%s285_s1 + $0x8] sm:$0xff]  ;;  %v17_v31 = vld [vmem:[%s288_s0] sm:$0xff] }
   0xc   :  { %57 = vmatpush.msra.mxu0 %v31_v10  ;;  %141 = vmatpush.msra.mxu2 %v31_v10 }
   0xd   :  { %88 = vmatpush.msra.mxu1 %v39_v15  ;;  %107 = vperm.xlu0 %153, %v99_v20  }
   0xe   :  { %58 = vmatpush.msra.mxu0 %v30_v14  ;;  %142 = vmatpush.msra.mxu2 %v30_v14 }
   0xf   :  { %89 = vmatpush.msra.mxu1 %v38_v17  ;;  %121 = vperm.xlu1 %154, %v113_v23  }
  0x10   :  { %59 = vmatpush.msra.mxu0 %v29_v16  ;;  %143 = vmatpush.msra.mxu2 %v29_v16 }
  0x11   :  { %90 = vmatpush.msra.mxu1 %v37_v19 }
  0x12   :  { %60 = vmatpush.msra.mxu0 %v28_v18  ;;  %144 = vmatpush.msra.mxu2 %v28_v18 }
  0x13   :  { %134 = vmatmul.msk.f32.vlgmr.msra.gmra.mxu1 %vm45_vm0, %v18_v22 }
  0x14   :  { %61 = vmatpush.msra.mxu0 %v27_v21  ;;  %145 = vmatpush.msra.mxu2 %v27_v21 }
  0x16   :  { %62 = vmatpush.msra.mxu0 %v26_v24  ;;  %146 = vmatpush.msra.mxu2 %v26_v24 }
  0x18   :  { %63 = vmatpush.msra.mxu0 %v25_v25  ;;  %147 = vmatpush.msra.mxu2 %v25_v25 }
  0x1a   :  { %64 = vmatpush.msra.mxu0 %v24_v26  ;;  %148 = vmatpush.msra.mxu2 %v24_v26 }
  0x1b   :  { %135 = vmatmul.msk.f32.gmra.mxu1 %vm45_vm0, %v20_v28 }
  0x1c   :  { %65 = vmatpush.msra.mxu0 %v23_v27  ;;  %149 = vmatpush.msra.mxu2 %v23_v27 }
  0x1e   :  { %66 = vmatpush.msra.mxu0 %v22_v29  ;;  %150 = vmatpush.msra.mxu2 %v22_v29 }
  0x20   :  { %67 = vmatpush.msra.mxu0 %v21_v30  ;;  %151 = vmatpush.msra.mxu2 %v21_v30 }
  0x21   :  { %68 = vmatmul.f32.vlgmr.msra.gmra.mxu0 %v17_v31  ;;  %71 = vmatmul.f32.vlgmr.msra.gmra.mxu2 %v19_v32 }
  0x77   :  { %v103_v34 = vpop.permute.xlu0 %102 }
  0x79   :  { %v117_v35 = vpop.permute.xlu1 %116 }
  0x7f   :  { %v108_v44 = vpop.permute.xlu0 %107 }
  0x81   :  { %v122_v46 = vpop.permute.xlu1 %121 }
  0x90   :  { %v92_v33 = vpop.f32.mrf.mxu1 }
  0x98   :  { %v95_v39 = vpop.f32.mrf.mxu1 }
  0x9e   :  { %v69_v36 = vpop.f32.mrf.mxu0 }
  0x9f   :  { %v93_v37 = vadd.f32 %v92_v33, %v69_v36 }
  0xa1   :  { %v110_v38 = vmul.f32 %v103_v34, %v93_v37 }
  0xa3   :  { %v124_v40 = vadd.f32 %v117_v35, %v110_v38 }
  0xa4   :  { %v72_v41 = vpop.f32.mrf.mxu2 }
  0xa5   :  { %v126_v42 = vmax.f32 %v124_v40, 0.0  ;;  %v96_v43 = vadd.f32 %v95_v39, %v72_v41 }
  0xa7   :  { %128 = vst [vmem:[%s289_s4] sm:$0xff] %v126_v42  ;;  %v111_v45 = vmul.f32 %v108_v44, %v96_v43 }
  0xa9   :  { %v125_v47 = vadd.f32 %v122_v46, %v111_v45 }
  0xab   :  { %v127_v48 = vmax.f32 %v125_v47, 0.0 }
  0xad   :  { %129 = vst [vmem:[%s289_s4 + $0x8] sm:$0xff] %v127_v48 }

// kernel: nm3dcnn_forward.9
= control target key start
LH: loop header
LB: loop body
LE: loop exit
PB: predicated region body
PF: predicated region fallthrough
CT: control target
= control target key end

     0   :  { %s478_s1 = inlined_call_operand.vmem [shape: f32[512,128], index: 1, kind: input, shape index: {}]   ;;  %s479_s0 = inlined_call_operand.vmem [shape: f32[10,512], index: 0, kind: input, shape index: {}]   ;;  %s480_s2 = inlined_call_operand.vmem [shape: f32[10,1], index: 2, kind: input, shape index: {}]   ;;  %s481_s3 = inlined_call_operand.vmem [shape: f32[10,1], index: 3, kind: input, shape index: {}]   ;;  %s482_s4 = inlined_call_operand.vmem [shape: f32[10,128], index: 4, kind: output, shape index: {}]  }
   0x1   :  { %v72_v0 = vld [vmem:[%s478_s1 + $0x178] sm:$0xff]  ;;  %v71_v1 = vld [vmem:[%s478_s1 + $0x170] sm:$0xff]  ;;  %v70_v5 = vld [vmem:[%s478_s1 + $0x168] sm:$0xff] }
   0x2   :  { %v88_v2 = vld [vmem:[%s478_s1 + $0x1f8] sm:$0xff]  ;;  %135 = vmatpush.msra.mxu2 %v72_v0  ;;  %v87_v6 = vld [vmem:[%s478_s1 + $0x1f0] sm:$0xff]  ;;  %v86_v9 = vld [vmem:[%s478_s1 + $0x1e8] sm:$0xff] }
   0x3   :  { %158 = vmatpush.msra.mxu3 %v88_v2  ;;  %v40_v3 = vld [vmem:[%s478_s1 + $0x78] sm:$0xff]  ;;  %v39_v7 = vld [vmem:[%s478_s1 + $0x70] sm:$0xff]  ;;  %v38_v10 = vld [vmem:[%s478_s1 + $0x68] sm:$0xff] }
   0x4   :  { %v56_v4 = vld [vmem:[%s478_s1 + $0xf8] sm:$0xff]  ;;  %89 = vmatpush.msra.mxu0 %v40_v3  ;;  %v55_v8 = vld [vmem:[%s478_s1 + $0xf0] sm:$0xff]  ;;  %136 = vmatpush.msra.mxu2 %v71_v1  ;;  %v69_v11 = vld [vmem:[%s478_s1 + $0x160] sm:$0xff] }
   0x5   :  { %112 = vmatpush.msra.mxu1 %v56_v4  ;;  %159 = vmatpush.msra.mxu3 %v87_v6  ;;  %v54_v12 = vld [vmem:[%s478_s1 + $0xe8] sm:$0xff]  ;;  %v85_v13 = vld [vmem:[%s478_s1 + $0x1e0] sm:$0xff]  ;;  %v68_v16 = vld [vmem:[%s478_s1 + $0x158] sm:$0xff]  ;;  %v218_v6 = vmov 0  }
   0x6   :  { %90 = vmatpush.msra.mxu0 %v39_v7  ;;  %137 = vmatpush.msra.mxu2 %v70_v5  ;;  %v37_v14 = vld [vmem:[%s478_s1 + $0x60] sm:$0xff]  ;;  %v84_v17 = vld [vmem:[%s478_s1 + $0x1d8] sm:$0xff]  ;;  %v67_v20 = vld [vmem:[%s478_s1 + $0x150] sm:$0xff] }
   0x7   :  { %113 = vmatpush.msra.mxu1 %v55_v8  ;;  %160 = vmatpush.msra.mxu3 %v86_v9  ;;  %v53_v15 = vld [vmem:[%s478_s1 + $0xe0] sm:$0xff]  ;;  %v36_v18 = vld [vmem:[%s478_s1 + $0x58] sm:$0xff]  ;;  %v83_v21 = vld [vmem:[%s478_s1 + $0x1d0] sm:$0xff] }
   0x8   :  { %91 = vmatpush.msra.mxu0 %v38_v10  ;;  %138 = vmatpush.msra.mxu2 %v69_v11  ;;  %v52_v19 = vld [vmem:[%s478_s1 + $0xd8] sm:$0xff]  ;;  %v35_v22 = vld [vmem:[%s478_s1 + $0x50] sm:$0xff]  ;;  %v66_v24 = vld [vmem:[%s478_s1 + $0x148] sm:$0xff] }
   0x9   :  { %114 = vmatpush.msra.mxu1 %v54_v12  ;;  %161 = vmatpush.msra.mxu3 %v85_v13  ;;  %v51_v23 = vld [vmem:[%s478_s1 + $0xd0] sm:$0xff]  ;;  %v82_v25 = vld [vmem:[%s478_s1 + $0x1c8] sm:$0xff]  ;;  %v65_v28 = vld [vmem:[%s478_s1 + $0x140] sm:$0xff] }
   0xa   :  { %92 = vmatpush.msra.mxu0 %v37_v14  ;;  %139 = vmatpush.msra.mxu2 %v68_v16  ;;  %v34_v26 = vld [vmem:[%s478_s1 + $0x48] sm:$0xff]  ;;  %v81_v29 = vld [vmem:[%s478_s1 + $0x1c0] sm:$0xff]  ;;  %v64_v32 = vld [vmem:[%s478_s1 + $0x138] sm:$0xff] }
   0xb   :  { %115 = vmatpush.msra.mxu1 %v53_v15  ;;  %162 = vmatpush.msra.mxu3 %v84_v17  ;;  %v50_v27 = vld [vmem:[%s478_s1 + $0xc8] sm:$0xff]  ;;  %v33_v30 = vld [vmem:[%s478_s1 + $0x40] sm:$0xff]  ;;  %v80_v33 = vld [vmem:[%s478_s1 + $0x1b8] sm:$0xff] }
   0xc   :  { %93 = vmatpush.msra.mxu0 %v36_v18  ;;  %140 = vmatpush.msra.mxu2 %v67_v20  ;;  %v49_v31 = vld [vmem:[%s478_s1 + $0xc0] sm:$0xff]  ;;  %v32_v34 = vld [vmem:[%s478_s1 + $0x38] sm:$0xff]  ;;  %v63_v36 = vld [vmem:[%s478_s1 + $0x130] sm:$0xff] }
   0xd   :  { %116 = vmatpush.msra.mxu1 %v52_v19  ;;  %163 = vmatpush.msra.mxu3 %v83_v21  ;;  %v48_v35 = vld [vmem:[%s478_s1 + $0xb8] sm:$0xff]  ;;  %v79_v37 = vld [vmem:[%s478_s1 + $0x1b0] sm:$0xff]  ;;  %v62_v40 = vld [vmem:[%s478_s1 + $0x128] sm:$0xff] }
   0xe   :  { %94 = vmatpush.msra.mxu0 %v35_v22  ;;  %141 = vmatpush.msra.mxu2 %v66_v24  ;;  %v31_v38 = vld [vmem:[%s478_s1 + $0x30] sm:$0xff]  ;;  %v78_v41 = vld [vmem:[%s478_s1 + $0x1a8] sm:$0xff]  ;;  %v61_v44 = vld [vmem:[%s478_s1 + $0x120] sm:$0xff] }
   0xf   :  { %117 = vmatpush.msra.mxu1 %v51_v23  ;;  %164 = vmatpush.msra.mxu3 %v82_v25  ;;  %v47_v39 = vld [vmem:[%s478_s1 + $0xb0] sm:$0xff]  ;;  %v30_v42 = vld [vmem:[%s478_s1 + $0x28] sm:$0xff]  ;;  %v77_v45 = vld [vmem:[%s478_s1 + $0x1a0] sm:$0xff] }
  0x10   :  { %95 = vmatpush.msra.mxu0 %v34_v26  ;;  %142 = vmatpush.msra.mxu2 %v65_v28  ;;  %v46_v43 = vld [vmem:[%s478_s1 + $0xa8] sm:$0xff]  ;;  %v29_v46 = vld [vmem:[%s478_s1 + $0x20] sm:$0xff]  ;;  %v60_v48 = vld [vmem:[%s478_s1 + $0x118] sm:$0xff] }
  0x11   :  { %118 = vmatpush.msra.mxu1 %v50_v27  ;;  %165 = vmatpush.msra.mxu3 %v81_v29  ;;  %v45_v47 = vld [vmem:[%s478_s1 + $0xa0] sm:$0xff]  ;;  %v76_v49 = vld [vmem:[%s478_s1 + $0x198] sm:$0xff]  ;;  %v59_v52 = vld [vmem:[%s478_s1 + $0x110] sm:$0xff] }
  0x12   :  { %96 = vmatpush.msra.mxu0 %v33_v30  ;;  %143 = vmatpush.msra.mxu2 %v64_v32  ;;  %v28_v50 = vld [vmem:[%s478_s1 + $0x18] sm:$0xff]  ;;  %v75_v53 = vld [vmem:[%s478_s1 + $0x190] sm:$0xff]  ;;  %v58_v56 = vld [vmem:[%s478_s1 + $0x108] sm:$0xff] }
  0x13   :  { %119 = vmatpush.msra.mxu1 %v49_v31  ;;  %166 = vmatpush.msra.mxu3 %v80_v33  ;;  %v44_v51 = vld [vmem:[%s478_s1 + $0x98] sm:$0xff]  ;;  %v27_v54 = vld [vmem:[%s478_s1 + $0x10] sm:$0xff]  ;;  %v74_v57 = vld [vmem:[%s478_s1 + $0x188] sm:$0xff] }
  0x14   :  { %97 = vmatpush.msra.mxu0 %v32_v34  ;;  %144 = vmatpush.msra.mxu2 %v63_v36  ;;  %v43_v55 = vld [vmem:[%s478_s1 + $0x90] sm:$0xff]  ;;  %v26_v58 = vld [vmem:[%s478_s1 + $0x8] sm:$0xff]  ;;  %v57_v60 = vld [vmem:[%s478_s1 + $0x100] sm:$0xff] }
  0x15   :  { %120 = vmatpush.msra.mxu1 %v48_v35  ;;  %167 = vmatpush.msra.mxu3 %v79_v37  ;;  %v42_v59 = vld [vmem:[%s478_s1 + $0x88] sm:$0xff]  ;;  %v73_v61 = vld [vmem:[%s478_s1 + $0x180] sm:$0xff]  ;;  %v19_v62 = vld [vmem:[%s479_s0 + $0x10] sm:$0xff] }
  0x16   :  { %98 = vmatpush.msra.mxu0 %v31_v38  ;;  %145 = vmatpush.msra.mxu2 %v62_v40  ;;  %v20_v63 = vld [vmem:[%s479_s0 + $0x18] sm:$0xff]  ;;  %v25_v0 = vld [vmem:[%s478_s1] sm:$0xff]  ;;  %v18_v3 = vld [vmem:[%s479_s0 + $0x8] sm:$0xff] }
  0x17   :  { %121 = vmatpush.msra.mxu1 %v47_v39  ;;  %168 = vmatpush.msra.mxu3 %v78_v41  ;;  %v41_v1 = vld [vmem:[%s478_s1 + $0x80] sm:$0xff]  ;;  %v23_v7 = vld [vmem:[%s479_s0 + $0x30] sm:$0x3]  ;;  %v24_v8 = vld [vmem:[%s479_s0 + $0x38] sm:$0x3] }
  0x18   :  { %99 = vmatpush.msra.mxu0 %v30_v42  ;;  %146 = vmatpush.msra.mxu2 %v61_v44  ;;  %v17_v2 = vld [vmem:[%s479_s0] sm:$0xff]  ;;  %v22_v10 = vld [vmem:[%s479_s0 + $0x28] sm:$0x3] }
  0x19   :  { %122 = vmatpush.msra.mxu1 %v46_v43  ;;  %169 = vmatpush.msra.mxu3 %v77_v45  ;;  %v181_v4 = vld [vmem:[%s480_s2] sm:$0xff]  ;;  %v182_v11 = vld [vmem:[%s480_s2 + $0x8] sm:$0x3] }
  0x1a   :  { %100 = vmatpush.msra.mxu0 %v29_v46  ;;  %147 = vmatpush.msra.mxu2 %v60_v48  ;;  %v195_v5 = vld [vmem:[%s481_s3] sm:$0xff]  ;;  %v196_v12 = vld [vmem:[%s481_s3 + $0x8] sm:$0x3] }
  0x1b   :  { %123 = vmatpush.msra.mxu1 %v45_v47  ;;  %170 = vmatpush.msra.mxu3 %v76_v49  ;;  %v21_v9 = vld [vmem:[%s479_s0 + $0x20] sm:$0x3] }
  0x1c   :  { %101 = vmatpush.msra.mxu0 %v28_v50  ;;  %148 = vmatpush.msra.mxu2 %v59_v52 }
  0x1d   :  { %124 = vmatpush.msra.mxu1 %v44_v51  ;;  %171 = vmatpush.msra.mxu3 %v75_v53 }
  0x1e   :  { %102 = vmatpush.msra.mxu0 %v27_v54  ;;  %149 = vmatpush.msra.mxu2 %v58_v56 }
  0x1f   :  { %125 = vmatpush.msra.mxu1 %v43_v55  ;;  %172 = vmatpush.msra.mxu3 %v74_v57 }
  0x20   :  { %103 = vmatpush.msra.mxu0 %v26_v58  ;;  %150 = vmatpush.msra.mxu2 %v57_v60 }
  0x21   :  { %126 = vmatpush.msra.mxu1 %v42_v59  ;;  %173 = vmatpush.msra.mxu3 %v73_v61 }
  0x22   :  { %151 = vmatmul.f32.vlgmr.msra.gmra.mxu2 %v19_v62  ;;  %174 = vmatmul.f32.vlgmr.msra.gmra.mxu3 %v20_v63 }
  0x23   :  { %104 = vmatpush.msra.mxu0 %v25_v0  ;;  %127 = vmatpush.msra.mxu1 %v41_v1 }
  0x24   :  { %105 = vmatmul.f32.vlgmr.msra.gmra.mxu0 %v17_v2  ;;  %128 = vmatmul.f32.vlgmr.msra.gmra.mxu1 %v18_v3 }
  0x25   :  { %216 = vset.pattern.permute.xlu0 %v218_v6  ;;  %217 = vset.pattern.permute.xlu1 %v218_v6 }
  0x26   :  { %185 = vperm.xlu0 %216, %v181_v4   ;;  %199 = vperm.xlu1 %217, %v195_v5  }
  0x2a   :  { %154 = vmatmul.f32.gmra.mxu2 %v23_v7  ;;  %177 = vmatmul.f32.gmra.mxu3 %v24_v8 }
  0x2c   :  { %108 = vmatmul.f32.gmra.mxu0 %v21_v9  ;;  %131 = vmatmul.f32.gmra.mxu1 %v22_v10 }
  0x2e   :  { %190 = vperm.xlu0 %216, %v182_v11   ;;  %204 = vperm.xlu1 %217, %v196_v12  }
  0x98   :  { %v186_v19 = vpop.permute.xlu0 %185  ;;  %v200_v20 = vpop.permute.xlu1 %199 }
  0xa0   :  { %v191_v31 = vpop.permute.xlu0 %190  ;;  %v205_v33 = vpop.permute.xlu1 %204 }
  0xa1   :  { %v106_v13 = vpop.f32.mrf.mxu0  ;;  %v129_v14 = vpop.f32.mrf.mxu1 }
  0xa2   :  { %v130_v15 = vadd.f32 %v129_v14, %v106_v13 }
  0xa5   :  { %v152_v16 = vpop.f32.mrf.mxu2  ;;  %v175_v17 = vpop.f32.mrf.mxu3 }
  0xa6   :  { %v153_v18 = vadd.f32 %v152_v16, %v130_v15 }
  0xa8   :  { %v176_v21 = vadd.f32 %v175_v17, %v153_v18 }
  0xa9   :  { %v109_v22 = vpop.f32.mrf.mxu0  ;;  %v132_v23 = vpop.f32.mrf.mxu1 }
  0xaa   :  { %v193_v24 = vmul.f32 %v186_v19, %v176_v21  ;;  %v133_v25 = vadd.f32 %v132_v23, %v109_v22 }
  0xac   :  { %v207_v26 = vadd.f32 %v200_v20, %v193_v24 }
  0xad   :  { %v155_v27 = vpop.f32.mrf.mxu2  ;;  %v178_v28 = vpop.f32.mrf.mxu3 }
  0xae   :  { %209 = vst [vmem:[%s482_s4] sm:$0xff] %v207_v26  ;;  %v156_v29 = vadd.f32 %v155_v27, %v133_v25 }
  0xb0   :  { %v179_v30 = vadd.f32 %v178_v28, %v156_v29 }
  0xb2   :  { %v194_v32 = vmul.f32 %v191_v31, %v179_v30 }
  0xb4   :  { %v208_v34 = vadd.f32 %v205_v33, %v194_v32 }
  0xb6   :  { %210 = vst [vmem:[%s482_s4 + $0x8] sm:$0x3] %v208_v34 }

</bundles_post_ra>
